<compile_context>
chip_gen: v6e
topology: v6e:2x2x1
jax: 0.10.0
libtpu: 0.0.40
codegen_flags: <defaults>
</compile_context>

<pallas_src>
import jax
import jax.numpy as jnp
from jax.experimental import pallas as pl
from jax.experimental.pallas import tpu as pltpu


def _round_up(n, m):
    return ((n + m - 1) // m) * m


def keep_model_kernel(x_ref, w1_ref, b1_ref, w2_ref, b2_ref, o_ref, z_acc):
    n = pl.program_id(1)

    @pl.when(n == 0)
    def _():
        z_acc[...] = jnp.zeros_like(z_acc)

    # Layer 1, one feature chunk: (TB, D) @ (D, TN) on the MXU, bf16 in / f32 acc.
    h = jnp.dot(x_ref[...].astype(jnp.bfloat16), w1_ref[...],
                preferred_element_type=jnp.float32)
    h = h + b1_ref[...]
    # LeakyReLU (PyTorch default negative_slope = 0.01).
    h = jnp.where(h > 0, h, 0.01 * h)
    # Layer 2 (out_features == 1) partial sum over this feature chunk: VPU multiply
    # + XLU lane reduction instead of an N=1 MXU pass.
    z_acc[...] += jnp.sum(h * w2_ref[...].astype(jnp.float32), axis=-1, keepdims=True)

    @pl.when(n == pl.num_programs(1) - 1)
    def _():
        z = z_acc[...] + b2_ref[0, 0]
        # Sigmoid: exp on the EUP, approx reciprocal also on the EUP (VPU slot free).
        y = pl.reciprocal(1.0 + jnp.exp(-z), approx=True)
        o_ref[...] = y.astype(o_ref.dtype)


def _pick_tn(d, block_n):
    """Feature-chunk width: full D if small, else the largest multiple of 128
    <= block_n that divides D; fall back to a single chunk otherwise."""
    if d <= block_n:
        return d
    tn = (block_n // 128) * 128
    while tn >= 128:
        if d % tn == 0:
            return tn
        tn -= 128
    return d


def keep_model_forward(x, w1, b1, w2, b2, *, block_b=1024, block_n=512):
    """x: (B, D) f32, w1: (D, D) bf16 stored [in, out], b1: (1, D) f32,
    w2: (1, D) bf16, b2: (1, 1) f32  ->  (B, 1) f32."""
    B, D = x.shape
    TN = _pick_tn(D, block_n)
    n_chunks = D // TN

    # Batch tile: multiple of 8 sublanes (or the whole batch if tiny).
    TB = min(block_b, _round_up(B, 8)) if B >= 8 else B
    # v7x: give the 'parallel' batch axis >= 2 steps so both TensorCores get work.
    if B >= 16 and pl.cdiv(B, TB) < 2:
        TB = _round_up(pl.cdiv(B, 2), 8)

    w1_bufs = 1 if n_chunks == 1 else 2  # single-buffer invariant operands

    def vmem_need(tb):
        return (2 * tb * D * x.dtype.itemsize                    # x double-buffer
                + w1_bufs * D * TN * w1.dtype.itemsize            # w1 chunk buffers
                + w1_bufs * TN * (b1.dtype.itemsize + w2.dtype.itemsize)
                + tb * TN * 4                                     # h chunk (f32)
                + tb * 4                                          # z accumulator
                + 2 * tb * 4)                                     # output buffers

    # Budget the batch tile so the working set fits comfortably on v7x (64 MiB VMEM).
    budget = 28 << 20
    while TB > 8 and vmem_need(TB) > budget:
        TB = max(8, _round_up(TB // 2, 8))

    vmem_limit = int(min(vmem_need(TB) * 1.5 + (8 << 20), 56 << 20))

    def _weight_spec(shape, index_map):
        if n_chunks == 1:  # grid-invariant: DMA'd once, keep a single buffer
            return pl.BlockSpec(shape, index_map, pipeline_mode=pl.Buffered(1))
        return pl.BlockSpec(shape, index_map)

    cost = pl.CostEstimate(
        flops=2 * B * D * D + 4 * B * D,
        transcendentals=2 * B,
        bytes_accessed=(x.size * x.dtype.itemsize
                        + w1.size * w1.dtype.itemsize
                        + b1.size * b1.dtype.itemsize
                        + w2.size * w2.dtype.itemsize
                        + B * 4),
    )

    return pl.pallas_call(
        keep_model_kernel,
        out_shape=jax.ShapeDtypeStruct((B, 1), x.dtype),
        grid=(pl.cdiv(B, TB), n_chunks),
        in_specs=[
            pl.BlockSpec((TB, D), lambda i, n: (i, 0)),          # stream x batch tiles
            _weight_spec((D, TN), lambda i, n: (0, n)),          # w1 feature chunks
            _weight_spec((1, TN), lambda i, n: (0, n)),          # b1 chunks
            _weight_spec((1, TN), lambda i, n: (0, n)),          # w2 chunks
            pl.BlockSpec(memory_space=pltpu.MemorySpace.SMEM),   # b2 scalar
        ],
        out_specs=pl.BlockSpec((TB, 1), lambda i, n: (i, 0)),
        scratch_shapes=[pltpu.VMEM((TB, 1), jnp.float32)],       # layer-2 partial z
        compiler_params=pltpu.CompilerParams(
            dimension_semantics=("parallel", "arbitrary"),
            vmem_limit_bytes=vmem_limit,
        ),
        cost_estimate=cost,
    )(x, w1, b1, w2, b2)


def init_params(key, input_size, *, weight_dtype=jnp.bfloat16):
    # PyTorch nn.Linear default init: U(-1/sqrt(fan_in), 1/sqrt(fan_in)).
    k1, k2, k3, k4 = jax.random.split(key, 4)
    bound = 1.0 / jnp.sqrt(jnp.float32(input_size))
    # w1 stored as [in, out] (transpose of torch's [out, in]) so the kernel does x @ W1.
    w1 = jax.random.uniform(k1, (input_size, input_size), jnp.float32,
                            minval=-bound, maxval=bound).astype(weight_dtype)
    b1 = jax.random.uniform(k2, (1, input_size), jnp.float32,
                            minval=-bound, maxval=bound)
    # w2 stored as a row vector (1, in) so the kernel does a lane reduction.
    w2 = jax.random.uniform(k3, (1, input_size), jnp.float32,
                            minval=-bound, maxval=bound).astype(weight_dtype)
    b2 = jax.random.uniform(k4, (1, 1), jnp.float32, minval=-bound, maxval=bound)
    return w1, b1, w2, b2


if __name__ == "__main__":
    batch = 8
    input_size = 32

    key = jax.random.PRNGKey(0)
    kx, kp = jax.random.split(key)
    x = jax.random.normal(kx, (batch, input_size), jnp.float32)
    w1, b1, w2, b2 = init_params(kp, input_size)

    out = keep_model_forward(x, w1, b1, w2, b2)
    out = jax.block_until_ready(out)

    # Pure-JAX reference (same math as the PyTorch forward), with matched bf16
    # rounding of the matmul operands and f32 accumulation.
    xb = x.astype(jnp.bfloat16).astype(jnp.float32)
    w1f = w1.astype(jnp.float32)
    w2f = w2.astype(jnp.float32)
    h_ref = xb @ w1f + b1
    h_ref = jnp.where(h_ref > 0, h_ref, 0.01 * h_ref)
    y_ref = jax.nn.sigmoid(h_ref @ w2f.T + b2)

    assert out.shape == (batch, 1)
    # Tolerance covers the EUP approx reciprocal in the sigmoid (~1e-4 relative).
    assert jnp.allclose(out, y_ref, atol=1e-3, rtol=1e-3), \
        float(jnp.max(jnp.abs(out - y_ref)))

    print("KERNEL_OK")
</pallas_src>

<mosaic_0001>
module attributes {stable_mosaic.version = 11 : i64} {
  func.func @keep_model_kernel(%arg0: i32, %arg1: i32, %arg2: memref<8x32xf32, #tpu.memory_space<vmem>>, %arg3: memref<32x32xbf16, #tpu.memory_space<vmem>>, %arg4: memref<1x32xf32, #tpu.memory_space<vmem>>, %arg5: memref<1x32xbf16, #tpu.memory_space<vmem>>, %arg6: memref<1x1xf32, #tpu.memory_space<smem>>, %arg7: memref<8x1xf32, #tpu.memory_space<vmem>>, %arg8: memref<8x1xf32, #tpu.memory_space<vmem>>) attributes {dimension_semantics = [#tpu.dimension_semantics<parallel>, #tpu.dimension_semantics<arbitrary>], iteration_bounds = array<i64: 1, 1>, scalar_prefetch = 0 : i64, scratch_operands = 1 : i64, tpu.core_type = #tpu.core_type<tc>, window_params = [{transform_indices = @transform_0, window_bounds = array<i64: 8, 32>}, {pipeline_mode = #tpu.pipeline_mode<synchronous>, transform_indices = @transform_1, window_bounds = array<i64: 32, 32>}, {pipeline_mode = #tpu.pipeline_mode<synchronous>, transform_indices = @transform_2, window_bounds = array<i64: 1, 32>}, {pipeline_mode = #tpu.pipeline_mode<synchronous>, transform_indices = @transform_3, window_bounds = array<i64: 1, 32>}, {transform_indices = @transform_4, window_bounds = array<i64: 1, 1>}, {transform_indices = @transform_5, window_bounds = array<i64: 8, 1>}]} {
    %c0_i32 = arith.constant 0 : i32
    %0 = arith.cmpi eq, %arg1, %c0_i32 : i32
    %1 = arith.extui %0 : i1 to i32
    %c0_i32_0 = arith.constant 0 : i32
    %2 = arith.cmpi ne, %1, %c0_i32_0 : i32
    scf.if %2 {
      %cst_17 = arith.constant 0.000000e+00 : f32
      %27 = vector.broadcast %cst_17 : f32 to vector<8x1xf32>
      %c0_18 = arith.constant 0 : index
      %c0_19 = arith.constant 0 : index
      %28 = vector.load %arg8[%c0_18, %c0_19] : memref<8x1xf32, #tpu.memory_space<vmem>>, vector<8x1xf32>
      tpu.vector_store %arg8[%c0_18, %c0_19], %27 {strides = array<i32>} : memref<8x1xf32, #tpu.memory_space<vmem>>, vector<8x1xf32>,
    } else {
    }
    %c0 = arith.constant 0 : index
    %c0_1 = arith.constant 0 : index
    %3 = vector.load %arg2[%c0, %c0_1] : memref<8x32xf32, #tpu.memory_space<vmem>>, vector<8x32xf32>
    %4 = arith.truncf %3 : vector<8x32xf32> to vector<8x32xbf16>
    %c0_2 = arith.constant 0 : index
    %c0_3 = arith.constant 0 : index
    %5 = vector.load %arg3[%c0_2, %c0_3] : memref<32x32xbf16, #tpu.memory_space<vmem>>, vector<32x32xbf16>
    %cst = arith.constant dense<0.000000e+00> : vector<8x32xf32>
    %6 = tpu.matmul %4, %5, %cst {dimension_numbers = #tpu.dot_dimension_numbers<[1], [0], [0], [1], [0, 0, 1, 1], [], []>} : vector<8x32xbf16>, vector<32x32xbf16>, vector<8x32xf32> -> vector<8x32xf32>
    %c0_4 = arith.constant 0 : index
    %c0_5 = arith.constant 0 : index
    %7 = vector.load %arg4[%c0_4, %c0_5] : memref<1x32xf32, #tpu.memory_space<vmem>>, vector<1x32xf32>
    %8 = vector.broadcast %7 : vector<1x32xf32> to vector<8x32xf32>
    %9 = arith.addf %6, %8 : vector<8x32xf32>
    %cst_6 = arith.constant 0.000000e+00 : f32
    %10 = vector.broadcast %cst_6 : f32 to vector<8x32xf32>
    %11 = arith.cmpf ogt, %9, %10 : vector<8x32xf32>
    %cst_7 = arith.constant 0.00999999977 : f32
    %12 = vector.broadcast %cst_7 : f32 to vector<8x32xf32>
    %13 = arith.mulf %12, %9 : vector<8x32xf32>
    %14 = arith.select %11, %9, %13 : vector<8x32xi1>, vector<8x32xf32>
    %c0_8 = arith.constant 0 : index
    %c0_9 = arith.constant 0 : index
    %15 = vector.load %arg8[%c0_8, %c0_9] : memref<8x1xf32, #tpu.memory_space<vmem>>, vector<8x1xf32>
    %c0_10 = arith.constant 0 : index
    %c0_11 = arith.constant 0 : index
    %16 = vector.load %arg5[%c0_10, %c0_11] : memref<1x32xbf16, #tpu.memory_space<vmem>>, vector<1x32xbf16>
    %17 = arith.extf %16 : vector<1x32xbf16> to vector<1x32xf32>
    %18 = vector.broadcast %17 : vector<1x32xf32> to vector<8x32xf32>
    %19 = arith.mulf %14, %18 : vector<8x32xf32>
    %cst_12 = arith.constant dense<0.000000e+00> : vector<8xf32>
    %20 = vector.multi_reduction <add>, %19, %cst_12 [1] : vector<8x32xf32> to vector<8xf32>
    %21 = vector.shape_cast %20 : vector<8xf32> to vector<8x1xf32>
    %22 = arith.addf %15, %21 : vector<8x1xf32>
    %c0_13 = arith.constant 0 : index
    %c0_14 = arith.constant 0 : index
    %23 = vector.load %arg8[%c0_13, %c0_14] : memref<8x1xf32, #tpu.memory_space<vmem>>, vector<8x1xf32>
    tpu.vector_store %arg8[%c0_13, %c0_14], %22 {strides = array<i32>} : memref<8x1xf32, #tpu.memory_space<vmem>>, vector<8x1xf32>,
    %c0_i32_15 = arith.constant 0 : i32
    %24 = arith.cmpi eq, %arg1, %c0_i32_15 : i32
    %25 = arith.extui %24 : i1 to i32
    %c0_i32_16 = arith.constant 0 : i32
    %26 = arith.cmpi ne, %25, %c0_i32_16 : i32
    scf.if %26 {
      %c0_17 = arith.constant 0 : index
      %c0_18 = arith.constant 0 : index
      %27 = vector.load %arg8[%c0_17, %c0_18] : memref<8x1xf32, #tpu.memory_space<vmem>>, vector<8x1xf32>
      %c0_19 = arith.constant 0 : index
      %c0_20 = arith.constant 0 : index
      %28 = memref.load %arg6[%c0_19, %c0_20] : memref<1x1xf32, #tpu.memory_space<smem>>
      %29 = vector.broadcast %28 : f32 to vector<8x1xf32>
      %30 = arith.addf %27, %29 : vector<8x1xf32>
      %cst_21 = arith.constant 0.000000e+00 : f32
      %31 = vector.broadcast %cst_21 : f32 to vector<8x1xf32>
      %32 = arith.subf %31, %30 : vector<8x1xf32>
      %33 = math.exp %32 : vector<8x1xf32>
      %cst_22 = arith.constant 1.000000e+00 : f32
      %34 = vector.broadcast %cst_22 : f32 to vector<8x1xf32>
      %35 = arith.addf %34, %33 : vector<8x1xf32>
      %36 = tpu.reciprocal %35 {approx = true} : vector<8x1xf32> -> vector<8x1xf32>
      %c0_23 = arith.constant 0 : index
      %c0_24 = arith.constant 0 : index
      %37 = vector.load %arg7[%c0_23, %c0_24] : memref<8x1xf32, #tpu.memory_space<vmem>>, vector<8x1xf32>
      tpu.vector_store %arg7[%c0_23, %c0_24], %36 {strides = array<i32>} : memref<8x1xf32, #tpu.memory_space<vmem>>, vector<8x1xf32>,
    } else {
    }
    return
  }
  func.func @transform_0(%arg0: i32, %arg1: i32) -> (i32, i32) {
    %c0_i32 = arith.constant 0 : i32
    %c0_i32_0 = arith.constant 0 : i32
    return %arg0, %c0_i32 : i32, i32
  }
  func.func @transform_1(%arg0: i32, %arg1: i32) -> (i32, i32) {
    %c0_i32 = arith.constant 0 : i32
    %c0_i32_0 = arith.constant 0 : i32
    return %c0_i32, %arg1 : i32, i32
  }
  func.func @transform_2(%arg0: i32, %arg1: i32) -> (i32, i32) {
    %c0_i32 = arith.constant 0 : i32
    %c0_i32_0 = arith.constant 0 : i32
    return %c0_i32, %arg1 : i32, i32
  }
  func.func @transform_3(%arg0: i32, %arg1: i32) -> (i32, i32) {
    %c0_i32 = arith.constant 0 : i32
    %c0_i32_0 = arith.constant 0 : i32
    return %c0_i32, %arg1 : i32, i32
  }
  func.func @transform_4(%arg0: i32, %arg1: i32) -> (i32, i32) {
    %c0_i32 = arith.constant 0 : i32
    %c0_i32_0 = arith.constant 0 : i32
    %c0_i32_1 = arith.constant 0 : i32
    return %c0_i32, %c0_i32_0 : i32, i32
  }
  func.func @transform_5(%arg0: i32, %arg1: i32) -> (i32, i32) {
    %c0_i32 = arith.constant 0 : i32
    %c0_i32_0 = arith.constant 0 : i32
    return %arg0, %c0_i32 : i32, i32
  }
}

</mosaic_0001>

<bundles_post_ra>
// kernel: tpu_custom_call.1
= control target key start
LH: loop header
LB: loop body
LE: loop exit
PB: predicated region body
PF: predicated region fallthrough
CT: control target
= control target key end

     0   :  { %11 = vsyncpa [#allocation5], 0  ;;  %s289_s0 = inlined_call_operand.hbm [shape: f32[8,32], index: 0, kind: input, shape index: {}]   ;;  %s290_s1 = inlined_call_operand.hbm [shape: bf16[32,32], index: 1, kind: input, shape index: {}]   ;;  %s291_s2 = inlined_call_operand.vmem [shape: f32[1,32], index: 2, kind: input, shape index: {}]   ;;  %s292_s3 = inlined_call_operand.vmem [shape: bf16[1,32], index: 3, kind: input, shape index: {}]   ;;  %s293_s4 = inlined_call_operand.<no memory space> [shape: f32[1,1], index: 4, kind: input, shape index: {}]   ;;  %s294_s5 = inlined_call_operand.vmem [shape: f32[8,1], index: 5, kind: output, shape index: {}]  }
   0x1   :  { %12 = vsyncpa [#allocation7], 0  ;;  %s230_s18 = smov [#allocation4]   ;;  %s231_s20 = smov [#allocation6]  }
   0x2   :  { %s19_s19 = sshll.u32 %s230_s18, 4  ;;  %s28_s21 = sshll.u32 %s231_s20, 4  ;;  %s20_s19 = int_to_ptr.vmem [resolvable:$true] %s19_s19  ;;  %s29_s21 = int_to_ptr.vmem [resolvable:$true] %s28_s21 }
   0x3   :  { %s194_s22 = scalar_lea.vmem %s20_s19, 128  ;;  %p199_p1 = scmp.lt.s32.totalorder %s20_s19, %s20_s19 }
   0x4   :  { %p195_p0 = scmp.ne.s32.totalorder %s20_s19, %s194_s22  ;;  %p200_p2 = scmp.lt.s32.totalorder %s194_s22, %s194_s22 }
   0x6   :  { %p201_p3 = por %p200_p2, %p199_p1 }
   0x8   :  { %p202_p4 = pnand %p201_p3, %p195_p0 }
   0xa   :  { %205 = shalt.err (!%p202_p4)
}
   0xb   :  { %22 = dma.hbm_to_vmem [thread:$0]  %s289_s0, 128, %s20_s19, [#allocation5]  }
   0xc   :  { %s214_s25 = scalar_lea.vmem %s29_s21, 256  ;;  %p219_p6 = scmp.lt.s32.totalorder %s29_s21, %s29_s21 }
   0xd   :  { %p215_p5 = scmp.ne.s32.totalorder %s29_s21, %s214_s25  ;;  %p220_p7 = scmp.lt.s32.totalorder %s214_s25, %s214_s25 }
   0xf   :  { %p221_p8 = por %p220_p7, %p219_p6 }
  0x11   :  { %p222_p9 = pnand %p221_p8, %p215_p5 }
  0x13   :  { %225 = shalt.err (!%p222_p9)
}
  0x14   :  { %s232_s26 = smov 64   ;;  %s233_s27 = smov 4  }
  0x15   :  { %34 = dma.hbm_to_vmem [thread:$0]  %s290_s1, 256, %s29_s21, [#allocation7], %s232_s26, %s232_s26, %s233_s27  }
  0x16   :  { %226 = dma.done.wait [#allocation5], 128  }
  0x17   :  { %227 = vsyncadd [#allocation5], 4294967168 }
  0x18   :  { %228 = dma.done.wait [#allocation7], 256  }
  0x19   :  { %229 = vsyncadd [#allocation7], 4294967040  ;;  %vm52_vm0 = vcmask 7168   ;;  %v234_v0 = vmov 0.0   ;;  %vm235_vm1 = vmmov 0   ;;  %v180_v1 = vld [vmem:[#allocation6 + $0x8] sm:$0xff]   ;;  %v129_v5 = vlaneseq }
  0x1a   :  { %53 = vst.msk [vmem:[#allocation2] sm:$0xff] %vm52_vm0, %v234_v0  ;;  %166 = vmatprep.subr.bf16.mxu0 %v234_v0  ;;  %170 = vmatprep.mubr.msk.bf16.mxu0 %vm235_vm1, %v234_v0  ;;  %v181_v2 = vld [vmem:[#allocation6] sm:$0xff]   ;;  %v54_v3 = vld [vmem:[#allocation4] sm:$0xff]  ;;  %vm79_vm2 = vcmask 261120   ;;  %v127_v7 = vld [vmem:[%s292_s3] sm:$0x1]  ;;  %v145_v24 = vstv %s293_s4 }
  0x1b   :  { %167 = vmatpush3.bf16.msra.mxu0 %v180_v1  ;;  %v55_v4 = vpack.c.bf16 %v54_v3, %v54_v3  ;;  %v130_v6 = vshrl.u32 %v129_v5, 7  ;;  %v159_v8 = vld [vmem:[%s291_s2] ss:$0 sm:$0xff]  ;;  %v128_v9 = vunpack.c.l.bf16 %v127_v7 }
  0x1c   :  { %168 = vmatprep.subr.bf16.mxu0 %v234_v0 }
  0x1d   :  { %v131_v10 = vsub.s32 0, %v130_v6 }
  0x1f   :  { %169 = vmatpush3.bf16.msra.mxu0 %v181_v2  ;;  %v132_v14 = vrot.slane %v128_v9, %v131_v10 }
  0x21   :  { %v126_v21 = vld [vmem:[#allocation2] sm:$0xff] }
  0x22   :  { %171 = vmatmul.mubr.msk.bf16.vlgmr.msra.gmra.mxu0 %vm79_vm2, %v55_v4 }
  0xe2   :  { %v117_v11 = vpop.f32.mrf.mxu0 }
  0xe3   :  { %v118_v12 = vadd.f32 %v159_v8, %v117_v11 }
  0xe4   :  { %v172_v13 = vpop.f32.mrf.mxu0 }
  0xe5   :  { %v124_v15 = vmul.f32 0.01, %v118_v12  ;;  %vm123_vm3 = vcmp.gt.f32.partialorder %v118_v12, 0.0 }
  0xe6   :  { %v120_v16 = vpop.f32.mrf.mxu0 }
  0xe7   :  { %v125_v17 = vsel %vm123_vm3, %v118_v12, %v124_v15 }
  0xe8   :  { %v173_v18 = vpop.f32.mrf.mxu0  ;;  %v133_v19 = vmul.f32 %v132_v14, %v125_v17 }
  0xea   :  { %v134_v20 = vsel %vm79_vm2, %v133_v19, 0.0 }
  0xeb   :  { %135 = vadd.xlane.f32.xlu0 %v134_v20 }
 0x174   :  { %v136_v22 = vpop.xlane.xlu0 %135 }
 0x175   :  { %v137_v23 = vadd.f32 %v136_v22, %v126_v21 }
 0x177   :  { %139 = vst.msk [vmem:[#allocation2] sm:$0xff] %vm52_vm0, %v137_v23 }
 0x17e   :  { %v143_v25 = vld [vmem:[#allocation2] sm:$0xff] }
 0x17f   :  { %v146_v26 = vadd.f32 %v145_v24, %v143_v25 }
 0x181   :  { %v147_v27 = vsub.f32 0.0, %v146_v26 }
 0x183   :  { %v148_v28 = vmul.f32 1.442695, %v147_v27 }
 0x185   :  { %182 = vpow2.f32 %v148_v28 }
 0x192   :  { %v183_v29 = vpop.eup %182 }
 0x193   :  { %v150_v30 = vadd.f32 1.0, %v183_v29 }
 0x195   :  { %184 = vrcp.f32 %v150_v30 }
 0x1a2   :  { %v185_v31 = vpop.eup %184 }
 0x1a3   :  { %152 = vst.msk [vmem:[%s294_s5] sm:$0xff] %vm52_vm0, %v185_v31 }
 0x1a4   :  { %157 = vsyncpa [#allocation5], 1 }
 0x1a5   :  { %158 = vsyncpa [#allocation7], 1 }

</bundles_post_ra>
